<compile_context>
chip_gen: v7x
topology: tpu7x:2x2x1
jax: 0.10.0
libtpu: 0.0.40
codegen_flags: <defaults>
</compile_context>

<pallas_src>
import functools

import jax
import jax.numpy as jnp
from jax.experimental import pallas as pl
from jax.experimental.pallas import tpu as pltpu


def _ohkm_mse_kernel(*refs, batch, tile_b, num_joints, hw, topk,
                     use_target_weight):
    if use_target_weight:
        pred_ref, gt_ref, tw_ref, out_ref, acc_ref = refs
    else:
        pred_ref, gt_ref, out_ref, acc_ref = refs

    i = pl.program_id(0)          # batch tile (parallel)
    c = pl.program_id(1)          # HW chunk (reduction axis, last in grid)

    @pl.when(c == 0)
    def _():
        acc_ref[...] = jnp.zeros_like(acc_ref)

    # Cast AFTER load (inputs may be bf16/f16); only this chunk is live in f32.
    p = pred_ref[...].astype(jnp.float32)          # (TB, J, CH)
    g = gt_ref[...].astype(jnp.float32)            # (TB, J, CH)
    d = p - g
    acc_ref[...] += jnp.sum(d * d, axis=-1)        # (TB, J) sum of squares

    @pl.when(c == pl.num_programs(1) - 1)
    def _():
        # Per-(sample, joint) loss: 0.5 * mean over the flattened heatmap.
        L = (0.5 / float(hw)) * acc_ref[...]        # (TB, J)

        if use_target_weight:
            # (p*w - g*w)^2 == w^2 * (p - g)^2: apply the weight after the HW
            # reduction (ulp-level difference from the torch op order only).
            w = tw_ref[...].astype(jnp.float32)[:, :, 0]   # (TB, J)
            L = L * (w * w)

        # Mask rows of a (possibly ragged) last batch tile.  Mask is applied
        # AFTER the reduction so NaN/Inf garbage in padded rows is dropped.
        row_ids = jax.lax.broadcasted_iota(jnp.int32, (tile_b, num_joints), 0)
        valid = (i * tile_b + row_ids) < batch
        L = jnp.where(valid, L, 0.0)

        # OHKM: per sample, sum of the top-k per-joint losses / k.
        # k iterations of (row max, remove exactly one argmax occurrence);
        # tie-safe and equal (as a value multiset) to torch.topk + gather + sum.
        col = jax.lax.broadcasted_iota(jnp.int32, (tile_b, num_joints), 1)
        row = L
        acc = jnp.zeros((tile_b, 1), jnp.float32)
        for t in range(topk):                       # topk is static -> unrolled
            m = jnp.max(row, axis=-1, keepdims=True)
            acc = acc + m
            if t + 1 < topk:
                first = jnp.min(jnp.where(row == m, col, num_joints),
                                axis=-1, keepdims=True)
                row = jnp.where(col == first, -jnp.inf, row)

        # Per-sample OHKM value; masked rows contribute exactly 0.
        out_ref[...] = (acc * (1.0 / float(topk)))[None, :, :]   # (1, TB, 1)


def _vmem_limit_bytes():
    # 3/4 of physical VMEM: ~96 MiB on v5e/v6e (128 MiB), ~48 MiB on v7x (64 MiB).
    try:
        cap = int(getattr(pltpu.get_tpu_info(), "vmem_capacity_bytes", 64 << 20))
    except Exception:
        cap = 64 << 20
    return min((cap * 3) // 4, 100 << 20)


def joints_ohkm_mse_loss(output, target, target_weight=None, *,
                         use_target_weight=True, topk=8,
                         block_batch=None, hw_chunk=None):
    B, J, H, W = output.shape
    HW = H * W
    assert topk <= J, "topk must not exceed the number of joints"

    # Trailing-dim-collapsing reshapes only - no transpose, no dtype cast here.
    pred = output.reshape(B, J, HW)
    gt = target.reshape(B, J, HW)

    itemsize = jnp.dtype(output.dtype).itemsize
    vmem_limit = _vmem_limit_bytes()
    usable = vmem_limit - (4 << 20)                 # headroom for out/scratch/etc.
    # Per-element VMEM cost of a (tb, J, ch) block:
    # 2 inputs x 2 pipeline buffers (HBM dtype) + ~3 live f32 chunk temporaries.
    bpe = 4 * itemsize + 12

    # HW chunk: full HW unless even an 8-sample tile would blow the budget,
    # in which case pick the largest 128-multiple divisor of HW that fits.
    if hw_chunk is not None:
        ch = hw_chunk
    elif HW % 128 != 0 or 8 * J * HW * bpe <= usable:
        ch = HW
    else:
        ch, d = 128, 128
        while d <= HW:
            if HW % d == 0 and 8 * J * d * bpe <= usable:
                ch = d
            d += 128
    n_chunks = max(1, HW // ch)
    assert ch * n_chunks == HW, "hw_chunk must divide H*W"

    # Batch tile: as large as VMEM allows, but always >= 2 batch-grid steps when
    # B >= 2 so the "parallel" axis shards across both TensorCores on v7x.
    if block_batch is not None:
        tb = block_batch
    else:
        min_grid_b = 2 if B >= 2 else 1
        tb_vmem = max(1, usable // (J * ch * bpe))
        tb = max(1, min(tb_vmem, -(-B // min_grid_b), B))
        if tb >= 8:
            tb = (tb // 8) * 8                      # sublane-friendly (cosmetic)
    grid_b = -(-B // tb)
    grid = (grid_b, n_chunks)

    kernel = functools.partial(
        _ohkm_mse_kernel,
        batch=B, tile_b=tb, num_joints=J, hw=HW, topk=topk,
        use_target_weight=use_target_weight,
    )

    in_specs = [
        pl.BlockSpec((tb, J, ch), lambda i, c: (i, 0, c)),
        pl.BlockSpec((tb, J, ch), lambda i, c: (i, 0, c)),
    ]
    args = [pred, gt]
    tw_bytes = 0
    if use_target_weight:
        tw = target_weight.reshape(B, J, 1)
        in_specs.append(pl.BlockSpec((tb, J, 1), lambda i, c: (i, 0, 0)))
        args.append(tw)
        tw_bytes = B * J * jnp.dtype(target_weight.dtype).itemsize

    cost = pl.CostEstimate(
        flops=3 * B * J * HW,
        transcendentals=0,
        bytes_accessed=2 * B * J * HW * itemsize + tw_bytes + grid_b * tb * 4,
    )

    per_sample = pl.pallas_call(
        kernel,
        out_shape=jax.ShapeDtypeStruct((grid_b, tb, 1), jnp.float32),
        grid=grid,
        in_specs=in_specs,
        out_specs=pl.BlockSpec((1, tb, 1), lambda i, c: (i, 0, 0)),
        scratch_shapes=[pltpu.VMEM((tb, J), jnp.float32)],
        compiler_params=pltpu.CompilerParams(
            dimension_semantics=("parallel", "arbitrary"),
            vmem_limit_bytes=vmem_limit),
        cost_estimate=cost,
    )(*args)

    # Padded rows were zeroed in-kernel; final mean over the real batch size.
    return jnp.sum(per_sample) / B


# ----------------------------------------------------------------------------
# Pure-JAX reference mirroring the PyTorch forward exactly.
# ----------------------------------------------------------------------------
def joints_ohkm_mse_loss_ref(output, target, target_weight, *,
                             use_target_weight=True, topk=8):
    B, J = output.shape[0], output.shape[1]
    hp = output.reshape(B, J, -1).astype(jnp.float32)
    hg = target.reshape(B, J, -1).astype(jnp.float32)
    tw = target_weight.reshape(B, J, 1).astype(jnp.float32)
    per_joint = []
    for idx in range(J):
        p = hp[:, idx]
        g = hg[:, idx]
        if use_target_weight:
            w = tw[:, idx]
            l = 0.5 * (p * w - g * w) ** 2
        else:
            l = 0.5 * (p - g) ** 2
        per_joint.append(l.mean(axis=1, keepdims=True))
    L = jnp.concatenate(per_joint, axis=1)           # (B, J)
    topk_vals, _ = jax.lax.top_k(L, topk)
    return jnp.mean(jnp.sum(topk_vals, axis=1) / topk)


if __name__ == "__main__":
    # Small shapes consistent with the module: topk=8 requires num_joints >= 8.
    B, J, H, W = 2, 16, 16, 16
    topk = 8

    key = jax.random.PRNGKey(0)
    k1, k2, k3 = jax.random.split(key, 3)
    output = 0.1 * jax.random.normal(k1, (B, J, H, W), jnp.float32)
    target = jax.nn.sigmoid(jax.random.normal(k2, (B, J, H, W), jnp.float32))
    target_weight = (jax.random.uniform(k3, (B, J, 1)) > 0.2).astype(jnp.float32)

    loss = joints_ohkm_mse_loss(output, target, target_weight,
                                use_target_weight=True, topk=topk)
    loss = jax.block_until_ready(loss)
    ref = joints_ohkm_mse_loss_ref(output, target, target_weight,
                                   use_target_weight=True, topk=topk)
    assert jnp.allclose(loss, ref, rtol=1e-5, atol=1e-6), (float(loss), float(ref))

    # Second check: bf16 inputs + a batch tile smaller than B (exercises the
    # in-kernel cast, batch tiling, HW-chunk accumulation path and the
    # "parallel" grid axis), plus use_target_weight=False (no tw DMA).
    B2 = 10
    k4, k5, k6 = jax.random.split(jax.random.PRNGKey(1), 3)
    output2 = (0.1 * jax.random.normal(k4, (B2, J, H, W))).astype(jnp.bfloat16)
    target2 = jax.nn.sigmoid(jax.random.normal(k5, (B2, J, H, W))).astype(jnp.bfloat16)
    target_weight2 = (jax.random.uniform(k6, (B2, J, 1)) > 0.2).astype(jnp.float32)

    loss2 = joints_ohkm_mse_loss(output2, target2, target_weight2,
                                 use_target_weight=True, topk=topk)
    loss2 = jax.block_until_ready(loss2)
    ref2 = joints_ohkm_mse_loss_ref(output2, target2, target_weight2,
                                    use_target_weight=True, topk=topk)
    assert jnp.allclose(loss2, ref2, rtol=1e-5, atol=1e-6), (float(loss2), float(ref2))

    loss3 = joints_ohkm_mse_loss(output2, target2, None,
                                 use_target_weight=False, topk=topk,
                                 hw_chunk=128)      # force the multi-chunk path
    loss3 = jax.block_until_ready(loss3)
    ref3 = joints_ohkm_mse_loss_ref(output2, target2, target_weight2,
                                    use_target_weight=False, topk=topk)
    assert jnp.allclose(loss3, ref3, rtol=1e-5, atol=1e-6), (float(loss3), float(ref3))

    print("KERNEL_OK")
</pallas_src>

<mosaic_0001>
module attributes {stable_mosaic.version = 11 : i64} {
  func.func @_ohkm_mse_kernel(%arg0: i32, %arg1: i32, %arg2: memref<1x16x256xf32, #tpu.memory_space<vmem>>, %arg3: memref<1x16x256xf32, #tpu.memory_space<vmem>>, %arg4: memref<1x16x1xf32, #tpu.memory_space<vmem>>, %arg5: memref<1x1x1xf32, #tpu.memory_space<vmem>>, %arg6: memref<1x16xf32, #tpu.memory_space<vmem>>) attributes {dimension_semantics = [#tpu.dimension_semantics<parallel>, #tpu.dimension_semantics<arbitrary>], iteration_bounds = array<i64: 2, 1>, scalar_prefetch = 0 : i64, scratch_operands = 1 : i64, tpu.core_type = #tpu.core_type<tc>, window_params = [{transform_indices = @transform_0, window_bounds = array<i64: 1, 16, 256>}, {transform_indices = @transform_1, window_bounds = array<i64: 1, 16, 256>}, {transform_indices = @transform_2, window_bounds = array<i64: 1, 16, 1>}, {transform_indices = @transform_3, window_bounds = array<i64: 1, 1, 1>}]} {
    %c0_i32 = arith.constant 0 : i32
    %0 = arith.cmpi eq, %arg1, %c0_i32 : i32
    %1 = arith.extui %0 : i1 to i32
    %c0_i32_0 = arith.constant 0 : i32
    %2 = arith.cmpi ne, %1, %c0_i32_0 : i32
    scf.if %2 {
      %cst_12 = arith.constant 0.000000e+00 : f32
      %14 = vector.broadcast %cst_12 : f32 to vector<1x16xf32>
      %c0_13 = arith.constant 0 : index
      %c0_14 = arith.constant 0 : index
      %15 = vector.load %arg6[%c0_13, %c0_14] : memref<1x16xf32, #tpu.memory_space<vmem>>, vector<1x16xf32>
      tpu.vector_store %arg6[%c0_13, %c0_14], %14 {strides = array<i32>} : memref<1x16xf32, #tpu.memory_space<vmem>>, vector<1x16xf32>,
    } else {
    }
    %c0 = arith.constant 0 : index
    %c0_1 = arith.constant 0 : index
    %c0_2 = arith.constant 0 : index
    %3 = vector.load %arg2[%c0, %c0_1, %c0_2] : memref<1x16x256xf32, #tpu.memory_space<vmem>>, vector<1x16x256xf32>
    %c0_3 = arith.constant 0 : index
    %c0_4 = arith.constant 0 : index
    %c0_5 = arith.constant 0 : index
    %4 = vector.load %arg3[%c0_3, %c0_4, %c0_5] : memref<1x16x256xf32, #tpu.memory_space<vmem>>, vector<1x16x256xf32>
    %5 = arith.subf %3, %4 : vector<1x16x256xf32>
    %c0_6 = arith.constant 0 : index
    %c0_7 = arith.constant 0 : index
    %6 = vector.load %arg6[%c0_6, %c0_7] : memref<1x16xf32, #tpu.memory_space<vmem>>, vector<1x16xf32>
    %7 = arith.mulf %5, %5 : vector<1x16x256xf32>
    %cst = arith.constant dense<0.000000e+00> : vector<1x16xf32>
    %8 = vector.multi_reduction <add>, %7, %cst [2] : vector<1x16x256xf32> to vector<1x16xf32>
    %9 = arith.addf %6, %8 : vector<1x16xf32>
    %c0_8 = arith.constant 0 : index
    %c0_9 = arith.constant 0 : index
    %10 = vector.load %arg6[%c0_8, %c0_9] : memref<1x16xf32, #tpu.memory_space<vmem>>, vector<1x16xf32>
    tpu.vector_store %arg6[%c0_8, %c0_9], %9 {strides = array<i32>} : memref<1x16xf32, #tpu.memory_space<vmem>>, vector<1x16xf32>,
    %c0_i32_10 = arith.constant 0 : i32
    %11 = arith.cmpi eq, %arg1, %c0_i32_10 : i32
    %12 = arith.extui %11 : i1 to i32
    %c0_i32_11 = arith.constant 0 : i32
    %13 = arith.cmpi ne, %12, %c0_i32_11 : i32
    scf.if %13 {
      %c0_12 = arith.constant 0 : index
      %c0_13 = arith.constant 0 : index
      %14 = vector.load %arg6[%c0_12, %c0_13] : memref<1x16xf32, #tpu.memory_space<vmem>>, vector<1x16xf32>
      %cst_14 = arith.constant 0.001953125 : f32
      %15 = vector.broadcast %cst_14 : f32 to vector<1x16xf32>
      %16 = arith.mulf %15, %14 : vector<1x16xf32>
      %c0_15 = arith.constant 0 : index
      %c0_16 = arith.constant 0 : index
      %c0_17 = arith.constant 0 : index
      %17 = vector.load %arg4[%c0_15, %c0_16, %c0_17] : memref<1x16x1xf32, #tpu.memory_space<vmem>>, vector<1x16x1xf32>
      %18 = vector.shape_cast %17 : vector<1x16x1xf32> to vector<1x16xf32>
      %19 = arith.mulf %18, %18 : vector<1x16xf32>
      %20 = arith.mulf %16, %19 : vector<1x16xf32>
      %21 = tpu.iota {dimensions = array<i32: 0>} : vector<1x16xi32>
      %c1_i32 = arith.constant 1 : i32
      %22 = arith.muli %arg0, %c1_i32 : i32
      %23 = vector.broadcast %22 : i32 to vector<1x16xi32>
      %24 = arith.addi %23, %21 : vector<1x16xi32>
      %c2_i32 = arith.constant 2 : i32
      %25 = vector.broadcast %c2_i32 : i32 to vector<1x16xi32>
      %26 = arith.cmpi slt, %24, %25 : vector<1x16xi32>
      %cst_18 = arith.constant 0.000000e+00 : f32
      %27 = vector.broadcast %cst_18 : f32 to vector<1x16xf32>
      %28 = arith.select %26, %20, %27 : vector<1x16xi1>, vector<1x16xf32>
      %29 = tpu.iota {dimensions = array<i32: 1>} : vector<1x16xi32>
      %cst_19 = arith.constant 0.000000e+00 : f32
      %30 = vector.broadcast %cst_19 : f32 to vector<1x1xf32>
      %cst_20 = arith.constant dense<0xFF800000> : vector<1xf32>
      %31 = vector.multi_reduction <maximumf>, %28, %cst_20 [1] : vector<1x16xf32> to vector<1xf32>
      %32 = vector.shape_cast %31 : vector<1xf32> to vector<1x1xf32>
      %33 = arith.addf %30, %32 : vector<1x1xf32>
      %34 = vector.broadcast %32 : vector<1x1xf32> to vector<1x16xf32>
      %35 = arith.cmpf oeq, %28, %34 : vector<1x16xf32>
      %c16_i32 = arith.constant 16 : i32
      %36 = vector.broadcast %c16_i32 : i32 to vector<1x16xi32>
      %37 = arith.select %35, %29, %36 : vector<1x16xi1>, vector<1x16xi32>
      %cst_21 = arith.constant dense<2147483647> : vector<1xi32>
      %38 = vector.multi_reduction <minsi>, %37, %cst_21 [1] : vector<1x16xi32> to vector<1xi32>
      %39 = vector.shape_cast %38 : vector<1xi32> to vector<1x1xi32>
      %40 = vector.broadcast %39 : vector<1x1xi32> to vector<1x16xi32>
      %41 = arith.cmpi eq, %29, %40 : vector<1x16xi32>
      %cst_22 = arith.constant 0xFF800000 : f32
      %42 = vector.broadcast %cst_22 : f32 to vector<1x16xf32>
      %43 = arith.select %41, %42, %28 : vector<1x16xi1>, vector<1x16xf32>
      %cst_23 = arith.constant dense<0xFF800000> : vector<1xf32>
      %44 = vector.multi_reduction <maximumf>, %43, %cst_23 [1] : vector<1x16xf32> to vector<1xf32>
      %45 = vector.shape_cast %44 : vector<1xf32> to vector<1x1xf32>
      %46 = arith.addf %33, %45 : vector<1x1xf32>
      %47 = vector.broadcast %45 : vector<1x1xf32> to vector<1x16xf32>
      %48 = arith.cmpf oeq, %43, %47 : vector<1x16xf32>
      %c16_i32_24 = arith.constant 16 : i32
      %49 = vector.broadcast %c16_i32_24 : i32 to vector<1x16xi32>
      %50 = arith.select %48, %29, %49 : vector<1x16xi1>, vector<1x16xi32>
      %cst_25 = arith.constant dense<2147483647> : vector<1xi32>
      %51 = vector.multi_reduction <minsi>, %50, %cst_25 [1] : vector<1x16xi32> to vector<1xi32>
      %52 = vector.shape_cast %51 : vector<1xi32> to vector<1x1xi32>
      %53 = vector.broadcast %52 : vector<1x1xi32> to vector<1x16xi32>
      %54 = arith.cmpi eq, %29, %53 : vector<1x16xi32>
      %cst_26 = arith.constant 0xFF800000 : f32
      %55 = vector.broadcast %cst_26 : f32 to vector<1x16xf32>
      %56 = arith.select %54, %55, %43 : vector<1x16xi1>, vector<1x16xf32>
      %cst_27 = arith.constant dense<0xFF800000> : vector<1xf32>
      %57 = vector.multi_reduction <maximumf>, %56, %cst_27 [1] : vector<1x16xf32> to vector<1xf32>
      %58 = vector.shape_cast %57 : vector<1xf32> to vector<1x1xf32>
      %59 = arith.addf %46, %58 : vector<1x1xf32>
      %60 = vector.broadcast %58 : vector<1x1xf32> to vector<1x16xf32>
      %61 = arith.cmpf oeq, %56, %60 : vector<1x16xf32>
      %c16_i32_28 = arith.constant 16 : i32
      %62 = vector.broadcast %c16_i32_28 : i32 to vector<1x16xi32>
      %63 = arith.select %61, %29, %62 : vector<1x16xi1>, vector<1x16xi32>
      %cst_29 = arith.constant dense<2147483647> : vector<1xi32>
      %64 = vector.multi_reduction <minsi>, %63, %cst_29 [1] : vector<1x16xi32> to vector<1xi32>
      %65 = vector.shape_cast %64 : vector<1xi32> to vector<1x1xi32>
      %66 = vector.broadcast %65 : vector<1x1xi32> to vector<1x16xi32>
      %67 = arith.cmpi eq, %29, %66 : vector<1x16xi32>
      %cst_30 = arith.constant 0xFF800000 : f32
      %68 = vector.broadcast %cst_30 : f32 to vector<1x16xf32>
      %69 = arith.select %67, %68, %56 : vector<1x16xi1>, vector<1x16xf32>
      %cst_31 = arith.constant dense<0xFF800000> : vector<1xf32>
      %70 = vector.multi_reduction <maximumf>, %69, %cst_31 [1] : vector<1x16xf32> to vector<1xf32>
      %71 = vector.shape_cast %70 : vector<1xf32> to vector<1x1xf32>
      %72 = arith.addf %59, %71 : vector<1x1xf32>
      %73 = vector.broadcast %71 : vector<1x1xf32> to vector<1x16xf32>
      %74 = arith.cmpf oeq, %69, %73 : vector<1x16xf32>
      %c16_i32_32 = arith.constant 16 : i32
      %75 = vector.broadcast %c16_i32_32 : i32 to vector<1x16xi32>
      %76 = arith.select %74, %29, %75 : vector<1x16xi1>, vector<1x16xi32>
      %cst_33 = arith.constant dense<2147483647> : vector<1xi32>
      %77 = vector.multi_reduction <minsi>, %76, %cst_33 [1] : vector<1x16xi32> to vector<1xi32>
      %78 = vector.shape_cast %77 : vector<1xi32> to vector<1x1xi32>
      %79 = vector.broadcast %78 : vector<1x1xi32> to vector<1x16xi32>
      %80 = arith.cmpi eq, %29, %79 : vector<1x16xi32>
      %cst_34 = arith.constant 0xFF800000 : f32
      %81 = vector.broadcast %cst_34 : f32 to vector<1x16xf32>
      %82 = arith.select %80, %81, %69 : vector<1x16xi1>, vector<1x16xf32>
      %cst_35 = arith.constant dense<0xFF800000> : vector<1xf32>
      %83 = vector.multi_reduction <maximumf>, %82, %cst_35 [1] : vector<1x16xf32> to vector<1xf32>
      %84 = vector.shape_cast %83 : vector<1xf32> to vector<1x1xf32>
      %85 = arith.addf %72, %84 : vector<1x1xf32>
      %86 = vector.broadcast %84 : vector<1x1xf32> to vector<1x16xf32>
      %87 = arith.cmpf oeq, %82, %86 : vector<1x16xf32>
      %c16_i32_36 = arith.constant 16 : i32
      %88 = vector.broadcast %c16_i32_36 : i32 to vector<1x16xi32>
      %89 = arith.select %87, %29, %88 : vector<1x16xi1>, vector<1x16xi32>
      %cst_37 = arith.constant dense<2147483647> : vector<1xi32>
      %90 = vector.multi_reduction <minsi>, %89, %cst_37 [1] : vector<1x16xi32> to vector<1xi32>
      %91 = vector.shape_cast %90 : vector<1xi32> to vector<1x1xi32>
      %92 = vector.broadcast %91 : vector<1x1xi32> to vector<1x16xi32>
      %93 = arith.cmpi eq, %29, %92 : vector<1x16xi32>
      %cst_38 = arith.constant 0xFF800000 : f32
      %94 = vector.broadcast %cst_38 : f32 to vector<1x16xf32>
      %95 = arith.select %93, %94, %82 : vector<1x16xi1>, vector<1x16xf32>
      %cst_39 = arith.constant dense<0xFF800000> : vector<1xf32>
      %96 = vector.multi_reduction <maximumf>, %95, %cst_39 [1] : vector<1x16xf32> to vector<1xf32>
      %97 = vector.shape_cast %96 : vector<1xf32> to vector<1x1xf32>
      %98 = arith.addf %85, %97 : vector<1x1xf32>
      %99 = vector.broadcast %97 : vector<1x1xf32> to vector<1x16xf32>
      %100 = arith.cmpf oeq, %95, %99 : vector<1x16xf32>
      %c16_i32_40 = arith.constant 16 : i32
      %101 = vector.broadcast %c16_i32_40 : i32 to vector<1x16xi32>
      %102 = arith.select %100, %29, %101 : vector<1x16xi1>, vector<1x16xi32>
      %cst_41 = arith.constant dense<2147483647> : vector<1xi32>
      %103 = vector.multi_reduction <minsi>, %102, %cst_41 [1] : vector<1x16xi32> to vector<1xi32>
      %104 = vector.shape_cast %103 : vector<1xi32> to vector<1x1xi32>
      %105 = vector.broadcast %104 : vector<1x1xi32> to vector<1x16xi32>
      %106 = arith.cmpi eq, %29, %105 : vector<1x16xi32>
      %cst_42 = arith.constant 0xFF800000 : f32
      %107 = vector.broadcast %cst_42 : f32 to vector<1x16xf32>
      %108 = arith.select %106, %107, %95 : vector<1x16xi1>, vector<1x16xf32>
      %cst_43 = arith.constant dense<0xFF800000> : vector<1xf32>
      %109 = vector.multi_reduction <maximumf>, %108, %cst_43 [1] : vector<1x16xf32> to vector<1xf32>
      %110 = vector.shape_cast %109 : vector<1xf32> to vector<1x1xf32>
      %111 = arith.addf %98, %110 : vector<1x1xf32>
      %112 = vector.broadcast %110 : vector<1x1xf32> to vector<1x16xf32>
      %113 = arith.cmpf oeq, %108, %112 : vector<1x16xf32>
      %c16_i32_44 = arith.constant 16 : i32
      %114 = vector.broadcast %c16_i32_44 : i32 to vector<1x16xi32>
      %115 = arith.select %113, %29, %114 : vector<1x16xi1>, vector<1x16xi32>
      %cst_45 = arith.constant dense<2147483647> : vector<1xi32>
      %116 = vector.multi_reduction <minsi>, %115, %cst_45 [1] : vector<1x16xi32> to vector<1xi32>
      %117 = vector.shape_cast %116 : vector<1xi32> to vector<1x1xi32>
      %118 = vector.broadcast %117 : vector<1x1xi32> to vector<1x16xi32>
      %119 = arith.cmpi eq, %29, %118 : vector<1x16xi32>
      %cst_46 = arith.constant 0xFF800000 : f32
      %120 = vector.broadcast %cst_46 : f32 to vector<1x16xf32>
      %121 = arith.select %119, %120, %108 : vector<1x16xi1>, vector<1x16xf32>
      %cst_47 = arith.constant dense<0xFF800000> : vector<1xf32>
      %122 = vector.multi_reduction <maximumf>, %121, %cst_47 [1] : vector<1x16xf32> to vector<1xf32>
      %123 = vector.shape_cast %122 : vector<1xf32> to vector<1x1xf32>
      %124 = arith.addf %111, %123 : vector<1x1xf32>
      %cst_48 = arith.constant 1.250000e-01 : f32
      %125 = vector.broadcast %cst_48 : f32 to vector<1x1xf32>
      %126 = arith.mulf %124, %125 : vector<1x1xf32>
      %127 = vector.shape_cast %126 : vector<1x1xf32> to vector<1x1x1xf32>
      %c0_49 = arith.constant 0 : index
      %c0_50 = arith.constant 0 : index
      %c0_51 = arith.constant 0 : index
      %128 = vector.load %arg5[%c0_49, %c0_50, %c0_51] : memref<1x1x1xf32, #tpu.memory_space<vmem>>, vector<1x1x1xf32>
      tpu.vector_store %arg5[%c0_49, %c0_50, %c0_51], %127 {strides = array<i32>} : memref<1x1x1xf32, #tpu.memory_space<vmem>>, vector<1x1x1xf32>,
    } else {
    }
    return
  }
  func.func @transform_0(%arg0: i32, %arg1: i32) -> (i32, i32, i32) {
    %c0_i32 = arith.constant 0 : i32
    %c0_i32_0 = arith.constant 0 : i32
    return %arg0, %c0_i32, %arg1 : i32, i32, i32
  }
  func.func @transform_1(%arg0: i32, %arg1: i32) -> (i32, i32, i32) {
    %c0_i32 = arith.constant 0 : i32
    %c0_i32_0 = arith.constant 0 : i32
    return %arg0, %c0_i32, %arg1 : i32, i32, i32
  }
  func.func @transform_2(%arg0: i32, %arg1: i32) -> (i32, i32, i32) {
    %c0_i32 = arith.constant 0 : i32
    %c0_i32_0 = arith.constant 0 : i32
    %c0_i32_1 = arith.constant 0 : i32
    return %arg0, %c0_i32, %c0_i32_0 : i32, i32, i32
  }
  func.func @transform_3(%arg0: i32, %arg1: i32) -> (i32, i32, i32) {
    %c0_i32 = arith.constant 0 : i32
    %c0_i32_0 = arith.constant 0 : i32
    %c0_i32_1 = arith.constant 0 : i32
    return %arg0, %c0_i32, %c0_i32_0 : i32, i32, i32
  }
}

</mosaic_0001>

<bundles_post_ra>
// kernel: tpu_custom_call.1
= control target key start
LH: loop header
LB: loop body
LE: loop exit
PB: predicated region body
PF: predicated region fallthrough
CT: control target
= control target key end

     0   :  { %8 = vsyncpa [#allocation4], 0  ;;  %s1562_s0 = inlined_call_operand.hbm [shape: f32[2,16,256], index: 0, kind: input, shape index: {}]   ;;  %s1563_s1 = inlined_call_operand.hbm [shape: f32[2,16,256], index: 1, kind: input, shape index: {}]   ;;  %s1564_s2 = inlined_call_operand.vmem [shape: f32[2,16,1], index: 2, kind: input, shape index: {}]   ;;  %s1565_s3 = inlined_call_operand.vmem [shape: f32[2,1,1], index: 3, kind: output, shape index: {}]  }
   0x1   :  { %10 = vsyncpa [#allocation4 + $0x1], 0 }
   0x2   :  { %11 = vsyncpa [#allocation6], 0 }
   0x3   :  { %13 = vsyncpa [#allocation6 + $0x1], 0  ;;  %s1253_s12 = smov 0   ;;  %s1255_s13 = smov 0  }
   0x4   :  { %s1257_s14 = smov 0   ;;  %s1259_s15 = smov 0  }
   0x5   :  { %s1261_s16 = smov 0   ;;  %s1263_s17 = smov 0  }
   0x6 LB: > { %s1019_s18 = sadd.s32 4294967295, %s1224_s17   ;;  %s31_s19 = sadd.s32 1, %s1220_s16  ;;  %s1224_s17 = sphi %s1263_s17, %s19_s17   ;;  %s1220_s16 = sphi %s1261_s16, %s1576_s16   ;;  %s1216_s15 = sphi %s1259_s15, %s1575_s15   ;;  %s1212_s14 = sphi %s1257_s14, %s1574_s14   ;;  %s1208_s13 = sphi %s1255_s13, %s1573_s13   ;;  %s1204_s12 = sphi %s1253_s12, %s1572_s12  }
   0x7   : > { %p33_p0 = scmp.ge.s32.totalorder %s31_s19, 2  ;;  %s40_s20 = sadd.s32 1, %s1212_s14 }
   0x8   : > { %p47_p1 = scmp.ne.s32.totalorder %s1212_s14, %s1208_s13  ;;  %p48_p2 = scmp.eq.s32.totalorder %s1224_s17, 0 }
   0x9   : > { %s1578_s19 = smov (%p33_p0, %s31_s19), 0  ;;  %p53_p4 = scmp.ne.s32.totalorder %s1208_s13, %s1204_s12 }
   0xa   : > { %p1289_p3 = por %p48_p2, %p47_p1  ;;  %s35_s22 = ssub.s32 %s1220_s16, %s1578_s19 }
   0xb   : > { %p54_p5 = scmp.eq.s32.totalorder %s1019_s18, 0  ;;  %p38_p6 = scmp.eq.s32.totalorder %s35_s22, 0 }
   0xc   : > { %p1054_p8 = scmp.lt.s32.totalorder %s1224_s17, 2  ;;  %s1305_s25 = sand.u32 1, %s1212_s14  }
   0xd   : > { %p1296_p7 = por %p54_p5, %p53_p4  ;;  %s1040_s26 = sshll.u32 %s1220_s16, 9 }
   0xe   : > { %s1302_s24 = scalar_select %p38_p6, %s1212_s14, %s40_s20  }
   0xf   : > { %s1568_s23 = scalar_select %p1296_p7, 1, 0 }
  0x10   : > { %s1023_s27 = sshll.u32 %s1305_s25, 5  ;;  %s1314_s30 = scalar_lea.hbm %s1562_s0, %s1040_s26 }
  0x11   : > { %s161_s4 = scalar_lea.vmem [#allocation3], %s1023_s27  ;;  %p1320_p9 = pnand %p1054_p8, %p1289_p3 }
  0x12   : > { %s170_s5 = sshll.u32 %s161_s4, 4  ;;  %s158_s7 = scalar_lea.sflag [#allocation4], %s1305_s25  ;;  %s1324_s5 = int_to_ptr.vmem [resolvable:$true] %s170_s5 }
  0x13   : > { %s1110_s8 = scalar_lea.hbm %s1314_s30, 512  ;;  %p1112_p11 = pneg %p1320_p9 }
  0x14   : > { %p1111_p10 = scmp.ne.s32.totalorder %s1314_s30, %s1110_s8  ;;  %s1115_s11 = scalar_lea.hbm %s1562_s0, 1024 }
  0x15   : > { %p1116_p0 = scmp.lt.u32.totalorder %s1314_s30, %s1562_s0  ;;  %p1117_p1 = scmp.lt.u32.totalorder %s1115_s11, %s1110_s8 }
  0x16   : > { %p1113_p12 = pnand %p1112_p11, %p1111_p10  ;;  %p1119_p3 = scmp.lt.u32.totalorder %s1110_s8, %s1314_s30 }
  0x17   : > { %p1118_p2 = por %p1117_p1, %p1116_p0 }
  0x18   : > { %p1114_p13 = pneg %p1113_p12 }
  0x19   : > { %p1120_p4 = por %p1119_p3, %p1118_p2 }
  0x1b   : > { %p1121_p5 = pnand %p1120_p4, %p1114_p13 }
  0x1d   : > { %1124 = shalt.err (!%p1121_p5)
}
  0x1e   : > { %s1125_s20 = scalar_lea.vmem %s1324_s5, 512  ;;  %s1226_s21 = smov [#allocation3]  }
  0x1f   : > { %p1126_p6 = scmp.ne.s32.totalorder %s1324_s5, %s1125_s20  ;;  %s1130_s22 = sshll.u32 %s1226_s21, 4  ;;  %s1131_s22 = int_to_ptr.vmem [resolvable:$false] %s1130_s22 }
  0x20   : > { %s1132_s28 = scalar_lea.vmem %s1131_s22, 1024  ;;  %p1133_p12 = scmp.lt.s32.totalorder %s1324_s5, %s1131_s22 }
  0x21   : > { %p1128_p8 = pnand %p1126_p6, %p1112_p11  ;;  %p1134_p0 = scmp.lt.s32.totalorder %s1132_s28, %s1125_s20 }
  0x23   : > { %p1129_p10 = pneg %p1128_p8  ;;  %p1135_p1 = por %p1134_p0, %p1133_p12 }
  0x25   : > { %p1136_p2 = pnand %p1135_p1, %p1129_p10 }
  0x27   : > { %1139 = shalt.err (!%p1136_p2)
}
  0x28   : > { %s1227_s29 = smov 256   ;;  %s1228_s4 = smov 16  }
  0x29   : > { %1050 = dma.hbm_to_vmem [thread:$0]  (!%p1320_p9), %s1314_s30, 512, %s1324_s5, %s158_s7, %s1227_s29, %s1227_s29, %s1228_s4  }
  0x2a   : > { %p1029_p13 = scmp.ge.s32.totalorder %s1224_s17, 1  ;;  %p209_p3 = scmp.lt.s32.totalorder %s1224_s17, 3 }
  0x2b   : > { %s1368_s11 = scalar_lea.hbm %s1563_s1, %s1040_s26  ;;  %s184_s12 = scalar_lea.vmem [#allocation5], %s1023_s27 }
  0x2c   : > { %p1359_p4 = pnand %p1029_p13, %p209_p3  ;;  %s193_s18 = sshll.u32 %s184_s12, 4  ;;  %s1372_s18 = int_to_ptr.vmem [resolvable:$true] %s193_s18 }
  0x2d   : > { %s181_s30 = scalar_lea.sflag [#allocation6], %s1305_s25  ;;  %s1140_s5 = scalar_lea.hbm %s1368_s11, 512 }
  0x2e   : > { %p1141_p5 = scmp.ne.s32.totalorder %s1368_s11, %s1140_s5  ;;  %s1145_s26 = scalar_lea.hbm %s1563_s1, 1024 }
  0x2f   : > { %p1146_p10 = scmp.lt.u32.totalorder %s1368_s11, %s1563_s1  ;;  %p1147_p12 = scmp.lt.u32.totalorder %s1145_s26, %s1140_s5 }
  0x30   : > { %p1143_p6 = pnand %p1141_p5, %p1112_p11  ;;  %p1149_p1 = scmp.lt.u32.totalorder %s1140_s5, %s1368_s11 }
  0x31   : > { %p1148_p0 = por %p1147_p12, %p1146_p10 }
  0x32   : > { %p1144_p8 = pneg %p1143_p6 }
  0x33   : > { %p1150_p2 = por %p1149_p1, %p1148_p0 }
  0x35   : > { %p1151_p13 = pnand %p1150_p2, %p1144_p8 }
  0x37   : > { %1154 = shalt.err (!%p1151_p13)
}
  0x38   : > { %s1155_s27 = scalar_lea.vmem %s1372_s18, 512  ;;  %s1229_s28 = smov [#allocation5]  }
  0x39   : > { %p1156_p3 = scmp.ne.s32.totalorder %s1372_s18, %s1155_s27  ;;  %s1160_s9 = sshll.u32 %s1229_s28, 4  ;;  %s1161_s9 = int_to_ptr.vmem [resolvable:$false] %s1160_s9 }
  0x3a   : > { %s1162_s10 = scalar_lea.vmem %s1161_s9, 1024  ;;  %p1163_p7 = scmp.lt.s32.totalorder %s1372_s18, %s1161_s9 }
  0x3b   : > { %p1158_p5 = pnand %p1156_p3, %p1112_p11  ;;  %p1164_p10 = scmp.lt.s32.totalorder %s1162_s10, %s1155_s27 }
  0x3d   : > { %p1159_p6 = pneg %p1158_p5  ;;  %p1165_p12 = por %p1164_p10, %p1163_p7 }
  0x3f   : > { %p1166_p0 = pnand %p1165_p12, %p1159_p6 }
  0x41   : > { %1169 = shalt.err (!%p1166_p0)
}
  0x42   : > { %1053 = dma.hbm_to_vmem [thread:$0]  (!%p1320_p9), %s1368_s11, 512, %s1372_s18, %s181_s30, %s1227_s29, %s1227_s29, %s1228_s4  }
  0x43   : > { %213 = sbr.rel (%p1359_p4) target bundleno = 3638 (0xe36), region = 32  ;;  %s215_s12 = sand.u32 (!%p1359_p4), 1, %s1208_s13  }
  0x44   : > { %s1030_s5 = sshll.u32 (!%p1359_p4), %s215_s12, 5  ;;  %s216_s7 = scalar_lea.sflag (!%p1359_p4), [#allocation4], %s215_s12 }
  0x45   : > { %s219_s20 = scalar_lea.vmem (!%p1359_p4), [#allocation3], %s1030_s5  ;;  %p1571_p7 = scmp.ne.s32.totalorder (!%p1359_p4), %s1568_s23, 0 }
  0x4a   : > { %1195 = dma.done.wait (%p1571_p7), %s216_s7, 512  }
  0x4b   : > { %1197 = vsyncadd (%p1571_p7), %s216_s7, 4294966784  ;;  %s225_s6 = scalar_lea.sflag [#allocation6], %s215_s12  ;;  %s228_s25 = scalar_lea.vmem [#allocation5], %s1030_s5 }
  0x4c   : > { %1199 = dma.done.wait (%p1571_p7), %s225_s6, 512  }
  0x4d   : > { %1201 = vsyncadd (%p1571_p7), %s225_s6, 4294966784  ;;  %v275_v0 = vld [vmem:[%s219_s20] sm:$0xff]  ;;  %v276_v1 = vld [vmem:[%s219_s20 + $0x8] sm:$0xff]  ;;  %p261_p9 = scmp.lt.s32.totalorder %s1216_s15, 1  ;;  %v300_v18 = vlaneseq  ;;  %v1230_v19 = vmov 1966171168  }
  0x4e   : > { %v279_v2 = vld [vmem:[%s228_s25] sm:$0xff]  ;;  %v280_v3 = vld [vmem:[%s228_s25 + $0x8] sm:$0xff]  ;;  %v277_v5 = vld [vmem:[%s219_s20 + $0x10] sm:$0xff]  ;;  %v369_v20 = vunpack.c.l.s4 %v1230_v19  ;;  %v1231_v25 = vmov 0   ;;  %vm273_vm0 = vcmask 122880   ;;  %vm479_vm1 = vcmask 130112  }
  0x4f   : > { %v283_v4 = vsub.f32 %v275_v0, %v279_v2  ;;  %v278_v6 = vld [vmem:[%s219_s20 + $0x18] sm:$0xff]  ;;  %v284_v7 = vsub.f32 %v276_v1, %v280_v3  ;;  %v281_v8 = vld [vmem:[%s228_s25 + $0x10] sm:$0xff]  ;;  %s1416_s23 = scalar_select %p261_p9, %s1216_s15, 1  ;;  %v1426_v22 = vshrl.u32 %v300_v18, 7  ;;  %1108 = vset.pattern.permute.xlu1 %v1231_v25  ;;  %1109 = vset.pattern.permute.xlu0 %v1231_v25 }
  0x50   : > { %v282_v9 = vld [vmem:[%s228_s25 + $0x18] sm:$0xff]  ;;  %v285_v11 = vsub.f32 %v277_v5, %v281_v8  ;;  %v370_v23 = vunpack.c.0.s8 %v369_v20 }
  0x51   : > { %v288_v10 = vmul.f32 %v283_v4, %v283_v4  ;;  %v286_v12 = vsub.f32 %v278_v6, %v282_v9  ;;  %v289_v13 = vmul.f32 %v284_v7, %v284_v7  ;;  %s1042_s29 = sshll.u32 %s1416_s23, 4  ;;  %v302_v60 = vsub.s32 0, %v1426_v22  ;;  %s268_s30 = scalar_lea.vmem %s1565_s3, %s1416_s23 }
  0x52   : > { %v290_v14 = vmul.f32 %v285_v11, %v285_v11  ;;  %s1422_s11 = scalar_lea.vmem %s1564_s2, %s1042_s29  ;;  %v1429_v26 = vsub.s32 %v370_v23, %v1426_v22  ;;  %v306_v61 = vsub.s32 1, %v1426_v22  ;;  %v310_v62 = vsub.s32 2, %v1426_v22 }
  0x53   : > { %v291_v15 = vmul.f32 %v286_v12, %v286_v12  ;;  %v292_v16 = vadd.f32 %v289_v13, %v288_v10  ;;  %v504_v21 = vld [vmem:[%s1422_s11] sm:$0xff]  ;;  %v505_v49 = vld [vmem:[%s1422_s11 + $0x8] sm:$0xff]  ;;  %v314_v63 = vsub.s32 3, %v1426_v22  ;;  %v318_v0 = vsub.s32 4, %v1426_v22 }
  0x54   : > { %v506_v24 = vmul.f32 %v504_v21, %v504_v21  ;;  %v507_v50 = vmul.f32 %v505_v49, %v505_v49  ;;  %v322_v1 = vsub.s32 5, %v1426_v22  ;;  %v326_v2 = vsub.s32 6, %v1426_v22 }
  0x55   : > { %293 = vadd.xlane.f32.xlu0 %v292_v16  ;;  %v295_v17 = vadd.f32 %v291_v15, %v290_v14  ;;  %v330_v3 = vsub.s32 7, %v1426_v22 }
  0x56   : > { %v510_v27 = vcombine.high %v506_v24, %v506_v24  ;;  %v517_v28 = vrot.slane %v506_v24, %v1429_v26  ;;  %v559_v51 = vcombine.high %v507_v50, %v507_v50  ;;  %v566_v52 = vrot.slane %v507_v50, %v1429_v26 }
  0x58   : > { %v524_v29 = vrot.slane %v510_v27, %v1429_v26  ;;  %v525_v30 = vcombine.high %v517_v28, %v517_v28  ;;  %v533_v32 = vrot.slane %v517_v28, %v1429_v26  ;;  %v573_v53 = vrot.slane %v559_v51, %v1429_v26 }
  0x59   : > { %296 = vadd.xlane.f32.xlu0 %v295_v17  ;;  %v574_v54 = vcombine.high %v566_v52, %v566_v52  ;;  %v582_v56 = vrot.slane %v566_v52, %v1429_v26 }
  0x5a   : > { %v526_v31 = vcombine.high %v524_v29, %v524_v29  ;;  %v540_v33 = vrot.slane %v524_v29, %v1429_v26  ;;  %v547_v34 = vrot.slane %v525_v30, %v1429_v26  ;;  %v575_v55 = vcombine.high %v573_v53, %v573_v53 }
  0x5b   : > { %v596_v57 = vrot.slane %v574_v54, %v1429_v26  ;;  %v589_v58 = vrot.slane %v573_v53, %v1429_v26 }
  0x5c   : > { %v554_v35 = vrot.slane %v526_v31, %v1429_v26  ;;  %v608_v36 = vcombine.low %v533_v32, %v547_v34  ;;  %v1034_v37 = vcombine.high %v533_v32, %v547_v34  ;;  %v603_v59 = vrot.slane %v575_v55, %v1429_v26 }
  0x5d   : > { %v657_v4 = vcombine.low %v582_v56, %v596_v57  ;;  %v1036_v5 = vcombine.high %v582_v56, %v596_v57 }
  0x5e   : > { %v610_v38 = vcombine.low %v540_v33, %v554_v35  ;;  %v1035_v39 = vcombine.high %v540_v33, %v554_v35  ;;  %v618_v40 = vrot.slane %v608_v36, %v1429_v26  ;;  %v625_v41 = vrot.slane %v1034_v37, %v1429_v26 }
  0x5f   : > { %v659_v7 = vcombine.low %v589_v58, %v603_v59  ;;  %v1037_v8 = vcombine.high %v589_v58, %v603_v59  ;;  %v667_v20 = vrot.slane %v657_v4, %v1429_v26  ;;  %v674_v21 = vrot.slane %v1036_v5, %v1429_v26 }
  0x60   : > { %v632_v42 = vrot.slane %v610_v38, %v1429_v26  ;;  %v639_v43 = vrot.slane %v1035_v39, %v1429_v26  ;;  %v640_v44 = vcombine.low %v618_v40, %v625_v41  ;;  %v1232_v59 = vmov 0.0  }
  0x61   : > { %v681_v27 = vrot.slane %v659_v7, %v1429_v26  ;;  %v688_v28 = vrot.slane %v1037_v8, %v1429_v26  ;;  %v689_v52 = vcombine.low %v667_v20, %v674_v21  ;;  %274 = vst.msk [vmem:[#allocation2] sm:$0x1] %vm273_vm0, %v1232_v59 }
  0x62   : > { %v641_v45 = vcombine.low %v632_v42, %v639_v43  ;;  %v648_v46 = vrot.slane %v640_v44, %v1429_v26 }
  0x63   : > { %v690_v56 = vcombine.low %v681_v27, %v688_v28 }
  0x64   : > { %v655_v47 = vrot.slane %v641_v45, %v1429_v26 }
  0x66   : > { %v656_v48 = vcombine.low %v648_v46, %v655_v47 }
  0x6f   : > { %707 = vperm.xlu0 %1109, %v656_v48  }
  0xe2   : > { %v294_v6 = vpop.xlane.xlu0 %293 }
  0xe3   : > { %v303_v9 = vrot.slane %v294_v6, %v302_v60  ;;  %v307_v10 = vrot.slane %v294_v6, %v306_v61  ;;  %v311_v11 = vrot.slane %v294_v6, %v310_v62  ;;  %v315_v12 = vrot.slane %v294_v6, %v314_v63 }
  0xe4   : > { %v319_v13 = vrot.slane %v294_v6, %v318_v0  ;;  %v323_v14 = vrot.slane %v294_v6, %v322_v1  ;;  %v327_v15 = vrot.slane %v294_v6, %v326_v2  ;;  %v331_v16 = vrot.slane %v294_v6, %v330_v3 }
  0xe5   : > { %v364_v17 = vcombine.low %v303_v9, %v307_v10  ;;  %v365_v19 = vcombine.low %v311_v11, %v315_v12 }
  0xe6   : > { %v297_v23 = vpop.xlane.xlu0 %296  ;;  %v366_v24 = vcombine.low %v319_v13, %v323_v14  ;;  %v367_v25 = vcombine.low %v327_v15, %v331_v16 }
  0xe7   : > { %v374_v29 = vrot.slane %v364_v17, %v1429_v26  ;;  %v381_v30 = vrot.slane %v365_v19, %v1429_v26  ;;  %v335_v31 = vrot.slane %v297_v23, %v302_v60  ;;  %v339_v32 = vrot.slane %v297_v23, %v306_v61 }
  0xe8   : > { %v388_v33 = vrot.slane %v366_v24, %v1429_v26  ;;  %v395_v34 = vrot.slane %v367_v25, %v1429_v26  ;;  %v343_v35 = vrot.slane %v297_v23, %v310_v62  ;;  %v347_v36 = vrot.slane %v297_v23, %v314_v63 }
  0xe9   : > { %v396_v37 = vcombine.low %v374_v29, %v381_v30  ;;  %v351_v38 = vrot.slane %v297_v23, %v318_v0  ;;  %v355_v39 = vrot.slane %v297_v23, %v322_v1  ;;  %v359_v40 = vrot.slane %v297_v23, %v326_v2 }
  0xea   : > { %v397_v41 = vcombine.low %v388_v33, %v395_v34  ;;  %v363_v42 = vrot.slane %v297_v23, %v330_v3  ;;  %v413_v43 = vcombine.low %v335_v31, %v339_v32  ;;  %v414_v44 = vcombine.low %v343_v35, %v347_v36 }
  0xeb   : > { %v404_v45 = vrot.slane %v396_v37, %v1429_v26  ;;  %v415_v46 = vcombine.low %v351_v38, %v355_v39  ;;  %v697_v61 = vrot.slane %v689_v52, %v1429_v26  ;;  %v704_v62 = vrot.slane %v690_v56, %v1429_v26 }
  0xec   : > { %v411_v47 = vrot.slane %v397_v41, %v1429_v26  ;;  %v416_v48 = vcombine.low %v359_v40, %v363_v42  ;;  %v423_v49 = vrot.slane %v413_v43, %v1429_v26  ;;  %v430_v50 = vrot.slane %v414_v44, %v1429_v26 }
  0xed   : > { %v437_v51 = vrot.slane %v415_v46, %v1429_v26  ;;  %v705_v0 = vcombine.low %v697_v61, %v704_v62  ;;  %v1478_v1 = vand.u32 127, %v300_v18  ;;  %v287_v18 = vld [vmem:[#allocation2] sm:$0x1]  ;;  %v739_v19 = vstv %s1216_s15 }
  0xee   : > { %v412_v53 = vcombine.low %v404_v45, %v411_v47  ;;  %v444_v54 = vrot.slane %v416_v48, %v1429_v26  ;;  %v445_v55 = vcombine.low %v423_v49, %v430_v50  ;;  %v708_v12 = vpop.permute.xlu0 %707  ;;  %v740_v21 = vadd.s32 %v739_v19, %v1426_v22 }
  0xef   : > { %v474_v2 = vadd.s32 4294967288, %v1478_v1  ;;  %v472_v4 = vsub.s32 %v1478_v1, %v1426_v22 }
  0xf0   : > { %463 = vperm.xlu1 %1108, %v412_v53   ;;  %v446_v57 = vcombine.low %v437_v51, %v444_v54  ;;  %v453_v58 = vrot.slane %v445_v55, %v1429_v26  ;;  %vm741_vm2 = vcmp.lt.s32.totalorder %v740_v21, 2 }
  0xf1   : > { %v477_v5 = vsub.s32 %v474_v2, %v1426_v22  ;;  %v715_v15 = vrot.slane %v708_v12, %v472_v4 }
  0xf2   : > { %v460_v60 = vrot.slane %v446_v57, %v1429_v26 }
  0xf4   : > { %v461_v63 = vcombine.low %v453_v58, %v460_v60 }
  0xf6   : > { %466 = vperm.xlu1 %1108, %v461_v63  }
  0xfa   : > { %710 = vperm.xlu1 %1108, %v705_v0  }
 0x16f   : > { %v464_v3 = vpop.permute.xlu1 %463 }
 0x170   : > { %v473_v7 = vrot.slane %v464_v3, %v472_v4 }
 0x175   : > { %v467_v6 = vpop.permute.xlu1 %466 }
 0x176   : > { %v478_v8 = vrot.slane %v467_v6, %v477_v5 }
 0x178   : > { %v480_v9 = vsel %vm479_vm1, %v478_v8, %v473_v7 }
 0x179   : > { %v487_v10 = vrot.slane %v480_v9, %v1429_v26  ;;  %v711_v11 = vpop.permute.xlu1 %710 }
 0x17a   : > { %v719_v14 = vrot.slane %v711_v11, %v477_v5 }
 0x17b   : > { %v494_v13 = vrot.slane %v487_v10, %v1429_v26 }
 0x17c   : > { %v720_v17 = vsel %vm479_vm1, %v719_v14, %v715_v15 }
 0x17d   : > { %v496_v16 = vadd.f32 %v494_v13, %v287_v18  ;;  %v727_v20 = vrot.slane %v720_v17, %v1429_v26 }
 0x17f   : > { %498 = vst.msk [vmem:[#allocation2] sm:$0x1] %vm273_vm0, %v496_v16  ;;  %v734_v25 = vrot.slane %v727_v20, %v1429_v26 }
 0x186   : > { %v502_v23 = vld [vmem:[#allocation2] sm:$0x1] }
 0x187   : > { %v503_v24 = vmul.f32 0.001953125, %v502_v23 }
 0x189   : > { %v736_v27 = vmul.f32 %v734_v25, %v503_v24 }
 0x18b   : > { %v742_v28 = vsel %vm741_vm2, %v736_v27, 0.0 }
 0x18c   : > { %v743_v29 = vsel %vm273_vm0, %v742_v28, -inf }
 0x18d   : > { %744 = vmax.xlane.f32.xlu1 %v743_v29 }
 0x21a   : > { %v1492_v30 = vpop.xlane.xlu1 %744 }
 0x21b   : > { %vm747_vm3 = vcmp.eq.f32.partialorder %v742_v28, %v1492_v30 }
 0x21c   : > { %v748_v31 = vsel %vm747_vm3, %v1478_v1, 16 }
 0x21d   : > { %v749_v32 = vsel %vm273_vm0, %v748_v31, 2147483647 }
 0x21e   : > { %v751_v33 = vshra.s32 %v749_v32, 16  ;;  %v750_v34 = vand.u32 65535, %v749_v32 }
 0x220   : > { %v753_v22 = vcvt.s32.f32 %v751_v33  ;;  %v752_v26 = vcvt.s32.f32 %v750_v34 }
 0x222   : > { %754 = vmin.xlane.f32.xlu1 %v753_v22 }
 0x2af   : > { %v755_v35 = vpop.xlane.xlu1 %754 }
 0x2b0   : > { %vm756_vm4 = vcmp.eq.f32.partialorder %v753_v22, %v755_v35  ;;  %v761_v37 = vcvt.f32.s32 %v755_v35 }
 0x2b1   : > { %v757_v36 = vsel %vm756_vm4, %v752_v26, inf }
 0x2b2   : > { %758 = vmin.xlane.f32.xlu0 %v757_v36  ;;  %v762_v39 = vshll.u32 %v761_v37, 16 }
 0x33f   : > { %v759_v38 = vpop.xlane.xlu0 %758 }
 0x340   : > { %v760_v40 = vcvt.f32.s32 %v759_v38 }
 0x342   : > { %v763_v41 = vadd.s32 %v762_v39, %v760_v40 }
 0x344   : > { %vm764_vm5 = vcmp.eq.s32.totalorder %v1478_v1, %v763_v41 }
 0x345   : > { %v765_v42 = vsel %vm764_vm5, -inf, %v742_v28 }
 0x346   : > { %v766_v43 = vsel %vm273_vm0, %v765_v42, -inf }
 0x347   : > { %767 = vmax.xlane.f32.xlu1 %v766_v43 }
 0x3d4   : > { %v1499_v44 = vpop.xlane.xlu1 %767 }
 0x3d5   : > { %vm770_vm6 = vcmp.eq.f32.partialorder %v765_v42, %v1499_v44 }
 0x3d6   : > { %v771_v45 = vsel %vm770_vm6, %v1478_v1, 16 }
 0x3d7   : > { %v772_v46 = vsel %vm273_vm0, %v771_v45, 2147483647 }
 0x3d8   : > { %v774_v47 = vshra.s32 %v772_v46, 16  ;;  %v773_v49 = vand.u32 65535, %v772_v46 }
 0x3da   : > { %v776_v48 = vcvt.s32.f32 %v774_v47  ;;  %v775_v51 = vcvt.s32.f32 %v773_v49 }
 0x3dc   : > { %777 = vmin.xlane.f32.xlu1 %v776_v48 }
 0x469   : > { %v778_v50 = vpop.xlane.xlu1 %777 }
 0x46a   : > { %vm779_vm7 = vcmp.eq.f32.partialorder %v776_v48, %v778_v50  ;;  %v784_v53 = vcvt.f32.s32 %v778_v50 }
 0x46b   : > { %v780_v52 = vsel %vm779_vm7, %v775_v51, inf }
 0x46c   : > { %781 = vmin.xlane.f32.xlu1 %v780_v52  ;;  %v785_v55 = vshll.u32 %v784_v53, 16 }
 0x4f9   : > { %v782_v54 = vpop.xlane.xlu1 %781 }
 0x4fa   : > { %v783_v56 = vcvt.f32.s32 %v782_v54 }
 0x4fc   : > { %v786_v57 = vadd.s32 %v785_v55, %v783_v56 }
 0x4fe   : > { %vm787_vm8 = vcmp.eq.s32.totalorder %v1478_v1, %v786_v57 }
 0x4ff   : > { %v788_v58 = vsel %vm787_vm8, -inf, %v765_v42 }
 0x500   : > { %v789_v59 = vsel %vm273_vm0, %v788_v58, -inf }
 0x501   : > { %790 = vmax.xlane.f32.xlu1 %v789_v59 }
 0x58e   : > { %v1506_v60 = vpop.xlane.xlu1 %790 }
 0x58f   : > { %vm793_vm9 = vcmp.eq.f32.partialorder %v788_v58, %v1506_v60 }
 0x590   : > { %v794_v61 = vsel %vm793_vm9, %v1478_v1, 16  ;;  %vm909_vm9 = vcmask 0  }
 0x591   : > { %v795_v62 = vsel %vm273_vm0, %v794_v61, 2147483647 }
 0x592   : > { %v797_v63 = vshra.s32 %v795_v62, 16  ;;  %v796_v2 = vand.u32 65535, %v795_v62 }
 0x594   : > { %v799_v0 = vcvt.s32.f32 %v797_v63  ;;  %v798_v4 = vcvt.s32.f32 %v796_v2 }
 0x596   : > { %800 = vmin.xlane.f32.xlu1 %v799_v0 }
 0x623   : > { %v801_v3 = vpop.xlane.xlu1 %800 }
 0x624   : > { %vm802_vm10 = vcmp.eq.f32.partialorder %v799_v0, %v801_v3  ;;  %v807_v6 = vcvt.f32.s32 %v801_v3 }
 0x625   : > { %v803_v5 = vsel %vm802_vm10, %v798_v4, inf }
 0x626   : > { %804 = vmin.xlane.f32.xlu1 %v803_v5  ;;  %v808_v8 = vshll.u32 %v807_v6, 16 }
 0x6b3   : > { %v805_v7 = vpop.xlane.xlu1 %804 }
 0x6b4   : > { %v806_v9 = vcvt.f32.s32 %v805_v7 }
 0x6b6   : > { %v809_v10 = vadd.s32 %v808_v8, %v806_v9 }
 0x6b8   : > { %vm810_vm11 = vcmp.eq.s32.totalorder %v1478_v1, %v809_v10 }
 0x6b9   : > { %v811_v11 = vsel %vm810_vm11, -inf, %v788_v58 }
 0x6ba   : > { %v812_v12 = vsel %vm273_vm0, %v811_v11, -inf }
 0x6bb   : > { %813 = vmax.xlane.f32.xlu1 %v812_v12 }
 0x748   : > { %v1513_v18 = vpop.xlane.xlu1 %813 }
 0x749   : > { %vm816_vm12 = vcmp.eq.f32.partialorder %v811_v11, %v1513_v18 }
 0x74a   : > { %v817_v13 = vsel %vm816_vm12, %v1478_v1, 16 }
 0x74b   : > { %v818_v14 = vsel %vm273_vm0, %v817_v13, 2147483647 }
 0x74c   : > { %v820_v15 = vshra.s32 %v818_v14, 16  ;;  %v819_v17 = vand.u32 65535, %v818_v14 }
 0x74e   : > { %v822_v16 = vcvt.s32.f32 %v820_v15  ;;  %v821_v20 = vcvt.s32.f32 %v819_v17  ;;  %v769_v17 = vadd.f32 %v1499_v44, %v1492_v30 }
 0x750   : > { %823 = vmin.xlane.f32.xlu1 %v822_v16 }
 0x7dd   : > { %v824_v19 = vpop.xlane.xlu1 %823 }
 0x7de   : > { %vm825_vm13 = vcmp.eq.f32.partialorder %v822_v16, %v824_v19  ;;  %v830_v23 = vcvt.f32.s32 %v824_v19  ;;  %v792_v19 = vadd.f32 %v1506_v60, %v769_v17 }
 0x7df   : > { %v826_v21 = vsel %vm825_vm13, %v821_v20, inf }
 0x7e0   : > { %827 = vmin.xlane.f32.xlu0 %v826_v21  ;;  %v831_v25 = vshll.u32 %v830_v23, 16  ;;  %v815_v20 = vadd.f32 %v1513_v18, %v792_v19 }
 0x86d   : > { %v828_v24 = vpop.xlane.xlu0 %827 }
 0x86e   : > { %v829_v27 = vcvt.f32.s32 %v828_v24 }
 0x870   : > { %v832_v28 = vadd.s32 %v831_v25, %v829_v27 }
 0x872   : > { %vm833_vm14 = vcmp.eq.s32.totalorder %v1478_v1, %v832_v28 }
 0x873   : > { %v834_v29 = vsel %vm833_vm14, -inf, %v811_v11 }
 0x874   : > { %v835_v31 = vsel %vm273_vm0, %v834_v29, -inf }
 0x875   : > { %836 = vmax.xlane.f32.xlu1 %v835_v31 }
 0x902   : > { %v1520_v32 = vpop.xlane.xlu1 %836 }
 0x903   : > { %vm839_vm15 = vcmp.eq.f32.partialorder %v834_v29, %v1520_v32  ;;  %v838_v21 = vadd.f32 %v1520_v32, %v815_v20 }
 0x904   : > { %v840_v33 = vsel %vm839_vm15, %v1478_v1, 16 }
 0x905   : > { %v841_v22 = vsel %vm273_vm0, %v840_v33, 2147483647 }
 0x906   : > { %v843_v34 = vshra.s32 %v841_v22, 16  ;;  %v842_v26 = vand.u32 65535, %v841_v22 }
 0x908   : > { %v845_v35 = vcvt.s32.f32 %v843_v34  ;;  %v844_v37 = vcvt.s32.f32 %v842_v26 }
 0x90a   : > { %846 = vmin.xlane.f32.xlu0 %v845_v35 }
 0x997   : > { %v847_v36 = vpop.xlane.xlu0 %846 }
 0x998   : > { %vm848_vm1 = vcmp.eq.f32.partialorder %v845_v35, %v847_v36  ;;  %v853_v39 = vcvt.f32.s32 %v847_v36 }
 0x999   : > { %v849_v38 = vsel %vm848_vm1, %v844_v37, inf }
 0x99a   : > { %850 = vmin.xlane.f32.xlu1 %v849_v38  ;;  %v854_v41 = vshll.u32 %v853_v39, 16 }
 0xa27   : > { %v851_v40 = vpop.xlane.xlu1 %850 }
 0xa28   : > { %v852_v42 = vcvt.f32.s32 %v851_v40 }
 0xa2a   : > { %v855_v43 = vadd.s32 %v854_v41, %v852_v42 }
 0xa2c   : > { %vm856_vm2 = vcmp.eq.s32.totalorder %v1478_v1, %v855_v43 }
 0xa2d   : > { %v857_v45 = vsel %vm856_vm2, -inf, %v834_v29 }
 0xa2e   : > { %v858_v46 = vsel %vm273_vm0, %v857_v45, -inf }
 0xa2f   : > { %859 = vmax.xlane.f32.xlu0 %v858_v46 }
 0xabc   : > { %v860_v47 = vpop.xlane.xlu0 %859 }
 0xabd   : > { %vm862_vm3 = vcmp.eq.f32.partialorder %v857_v45, %v860_v47  ;;  %v861_v23 = vadd.f32 %v860_v47, %v838_v21 }
 0xabe   : > { %v863_v48 = vsel %vm862_vm3, %v1478_v1, 16 }
 0xabf   : > { %v864_v49 = vsel %vm273_vm0, %v863_v48, 2147483647 }
 0xac0   : > { %v866_v50 = vshra.s32 %v864_v49, 16  ;;  %v865_v52 = vand.u32 65535, %v864_v49 }
 0xac2   : > { %v868_v51 = vcvt.s32.f32 %v866_v50  ;;  %v867_v54 = vcvt.s32.f32 %v865_v52 }
 0xac4   : > { %869 = vmin.xlane.f32.xlu1 %v868_v51 }
 0xb51   : > { %v870_v53 = vpop.xlane.xlu1 %869 }
 0xb52   : > { %vm871_vm4 = vcmp.eq.f32.partialorder %v868_v51, %v870_v53  ;;  %v876_v56 = vcvt.f32.s32 %v870_v53 }
 0xb53   : > { %v872_v55 = vsel %vm871_vm4, %v867_v54, inf }
 0xb54   : > { %873 = vmin.xlane.f32.xlu0 %v872_v55  ;;  %v877_v58 = vshll.u32 %v876_v56, 16 }
 0xbe1   : > { %v874_v57 = vpop.xlane.xlu0 %873 }
 0xbe2   : > { %v875_v59 = vcvt.f32.s32 %v874_v57 }
 0xbe4   : > { %v878_v61 = vadd.s32 %v877_v58, %v875_v59 }
 0xbe6   : > { %vm879_vm5 = vcmp.eq.s32.totalorder %v1478_v1, %v878_v61 }
 0xbe7   : > { %v880_v62 = vsel %vm879_vm5, -inf, %v857_v45 }
 0xbe8   : > { %v881_v63 = vsel %vm273_vm0, %v880_v62, -inf }
 0xbe9   : > { %882 = vmax.xlane.f32.xlu1 %v881_v63 }
 0xc76   : > { %v883_v0 = vpop.xlane.xlu1 %882 }
 0xc77   : > { %vm885_vm6 = vcmp.eq.f32.partialorder %v880_v62, %v883_v0  ;;  %v884_v24 = vadd.f32 %v883_v0, %v861_v23 }
 0xc78   : > { %v886_v2 = vsel %vm885_vm6, %v1478_v1, 16 }
 0xc79   : > { %v887_v3 = vsel %vm273_vm0, %v886_v2, 2147483647 }
 0xc7a   : > { %v889_v4 = vshra.s32 %v887_v3, 16  ;;  %v888_v6 = vand.u32 65535, %v887_v3 }
 0xc7c   : > { %v891_v5 = vcvt.s32.f32 %v889_v4  ;;  %v890_v8 = vcvt.s32.f32 %v888_v6 }
 0xc7e   : > { %892 = vmin.xlane.f32.xlu0 %v891_v5 }
 0xd0b   : > { %v893_v7 = vpop.xlane.xlu0 %892 }
 0xd0c   : > { %vm894_vm7 = vcmp.eq.f32.partialorder %v891_v5, %v893_v7  ;;  %v899_v10 = vcvt.f32.s32 %v893_v7 }
 0xd0d   : > { %v895_v9 = vsel %vm894_vm7, %v890_v8, inf }
 0xd0e   : > { %896 = vmin.xlane.f32.xlu1 %v895_v9  ;;  %v900_v12 = vshll.u32 %v899_v10, 16 }
 0xd9b   : > { %v897_v11 = vpop.xlane.xlu1 %896 }
 0xd9c   : > { %v898_v13 = vcvt.f32.s32 %v897_v11 }
 0xd9e   : > { %v901_v14 = vadd.s32 %v900_v12, %v898_v13 }
 0xda0   : > { %vm902_vm8 = vcmp.eq.s32.totalorder %v1478_v1, %v901_v14 }
 0xda1   : > { %v903_v15 = vsel %vm902_vm8, -inf, %v880_v62 }
 0xda2   : > { %v904_v16 = vsel %vm273_vm0, %v903_v15, -inf }
 0xda3   : > { %905 = vmax.xlane.f32.xlu0 %v904_v16 }
 0xe30   : > { %v906_v25 = vpop.xlane.xlu0 %905 }
 0xe31   : > { %v907_v27 = vadd.f32 %v906_v25, %v884_v24 }
 0xe33   : > { %v908_v1 = vmul.f32 0.125, %v907_v27 }
 0xe35   : > { %910 = vst.msk [vmem:[%s268_s30] sm:$0x1] %vm909_vm9, %v908_v1 }
 0xe36 PF: > { %s19_s17 = sadd.s32 1, %s1224_s17   ;;  %s1572_s12 = smov %s1208_s13 }
 0xe37   : > { %p16_p11 = scmp.ge.s32.totalorder %s19_s17, 4   ;;  %s1573_s13 = smov %s1212_s14 }
 0xe38   : > { %s1574_s14 = smov %s1302_s24  ;;  %s1575_s15 = smov %s1220_s16 }
 0xe39   : > { %s1576_s16 = smov %s1578_s19  ;;  %18 = sbr.rel (!%p16_p11) target bundleno = 6 (0x6), region = 96 }
 0xe40   :  { %928 = vsyncpa [#allocation4], 1 }
 0xe41   :  { %930 = vsyncpa [#allocation4 + $0x1], 1 }
 0xe42   :  { %931 = vsyncpa [#allocation6], 1 }
 0xe43   :  { %933 = vsyncpa [#allocation6 + $0x1], 1 }

</bundles_post_ra>
